<compile_context>
chip_gen: v7x
topology: tpu7x:2x2x1
jax: 0.10.0
libtpu: 0.0.40
codegen_flags: <defaults>
</compile_context>

<pallas_src>
import jax
import jax.numpy as jnp
from jax.experimental import pallas as pl
from jax.experimental.pallas import tpu as pltpu


# (x_part, w_part) pairs packed into the contraction dim of the single MXU pass.
# x = x0+x1+x2 and w = w0+w1+w2 are exact 3-way bf16 splits of the f32 operands; summing
# these 8 products reproduces x*w to ~2^-24 relative error (only the ~2^-32 x2*w2 term is
# dropped).  8 pairs * F features -> K = 8*F (= 32 for this module), a friendly MXU shape.
_PAIRS = ((0, 0), (0, 1), (1, 0), (0, 2), (2, 0), (1, 1), (1, 2), (2, 1))


def dense_embed_kernel(xk_ref, wd_ref, o_ref):
    # xk_ref: [TB, 8F] bf16 (batch tile of split feature scalars)
    # wd_ref: [8F, F*E] bf16 block-diagonal split weights (resident across the grid)
    # o_ref : [TB, F*E]  lane-dense output tile
    # Single DEFAULT-precision bf16 MXU pass with f32 accumulation (no HIGHEST multi-pass).
    o_ref[...] = jnp.dot(
        xk_ref[...], wd_ref[...], preferred_element_type=jnp.float32
    ).astype(o_ref.dtype)


def _split3_bf16(a):
    """Split an f32 array into three bf16 parts whose sum reproduces it (~2^-25 residual)."""
    a = a.astype(jnp.float32)          # matches .float() in the PyTorch reference
    p0 = a.astype(jnp.bfloat16)
    r = a - p0.astype(jnp.float32)
    p1 = r.astype(jnp.bfloat16)
    p2 = (r - p1.astype(jnp.float32)).astype(jnp.bfloat16)
    return p0, p1, p2


def _block_diag(w):
    """[F, E] -> [F, F*E] with row f holding w[f] in columns f*E:(f+1)*E (exact: 0/1 mask)."""
    F, E = w.shape
    return (jnp.eye(F, dtype=w.dtype)[:, :, None] * w[None, :, :]).reshape(F, F * E)


def _choose_tb(B, tb, fe, out_itemsize):
    """Pick the batch tile: big (amortize ~0.35us/step), VMEM-safe, >=2 steps for v7x."""
    # Double-buffered pipeline bytes per row: output buf + lane-padded (128) bf16 input buf.
    row_bytes = 2 * (fe * out_itemsize + 128 * 2)
    tb = min(tb, max(8, ((20 << 20) // row_bytes) // 8 * 8))   # <=~20 MiB pipelined VMEM
    if B <= 1024:
        return B                                # single full-extent block (legal for any B)
    half = ((-(-B // 2)) + 7) // 8 * 8          # >=2 "parallel" grid steps (v7x megacore)
    return min(tb, half)


def _dense_embed_pallas(xk, wd, fe, out_dtype, tb):
    """xk: [B, 8F] bf16 split features, wd: [8F, F*E] bf16 split weights -> [B, F*E]."""
    B, kdim = xk.shape
    TB = _choose_tb(B, tb, fe, jnp.dtype(out_dtype).itemsize)
    # Ragged last block instead of pad/crop: rows are independent, OOB output rows dropped.
    return pl.pallas_call(
        dense_embed_kernel,
        out_shape=jax.ShapeDtypeStruct((B, fe), out_dtype),
        grid=(pl.cdiv(B, TB),),
        in_specs=[
            pl.BlockSpec((TB, kdim), lambda i: (i, 0)),   # batch-tiled split features
            pl.BlockSpec((kdim, fe), lambda i: (0, 0)),   # weights resident across the grid
        ],
        out_specs=pl.BlockSpec((TB, fe), lambda i: (i, 0)),
        compiler_params=pltpu.CompilerParams(
            dimension_semantics=("parallel",),            # shard batch tiles across TCs (v7x)
            # vmem_limit_bytes only needed if tb is pushed past ~8192 on v5e/v6e.
        ),
    )(xk, wd)


def dense_embedding_forward(feat_values, weights, axis=2, *, out_dtype=jnp.float32,
                            tb=8192, use_pallas=None):
    """feat_values: [B, F] (any real dtype), weights: [F, E].

    axis=1 -> [B, F, E];  axis=2 -> [B, 1, F*E];  else -> ([B, F, E], [B, F*E]).
    """
    B, F = feat_values.shape
    F2, E = weights.shape
    assert F == F2
    FE = F * E

    if use_pallas is None:
        # Below ~1M output elements the fused XLA broadcast already sits at the HBM roofline
        # and pallas_call dispatch + per-step overhead dominates.
        use_pallas = B * FE >= (1 << 20)

    if use_pallas:
        # NOTE: we do NOT pre-expand x to [B, F*E] (that would ~triple HBM traffic); the
        # split inputs are only 8F bf16 columns (~64 B/row) vs 4*F*E output bytes per row.
        xp = _split3_bf16(feat_values)                                   # 3 x [B, F] bf16
        wp = _split3_bf16(weights)                                       # 3 x [F, E] bf16
        xk = jnp.concatenate([xp[i] for i, _ in _PAIRS], axis=1)         # [B, 8F] bf16
        wd = jnp.concatenate([_block_diag(wp[j]) for _, j in _PAIRS], axis=0)  # [8F, FE]
        flat = _dense_embed_pallas(xk, wd, FE, out_dtype, tb)
    else:
        flat = (feat_values.astype(jnp.float32)[:, :, None]
                * weights.astype(jnp.float32)[None, :, :]).reshape(B, FE).astype(out_dtype)

    if axis == 1:
        return flat.reshape(B, F, E)            # torch.cat(..., dim=1)
    elif axis == 2:
        return flat.reshape(B, 1, FE)           # torch.cat(..., dim=-1)
    else:
        return flat.reshape(B, F, E), flat      # (dim1_out, dim2_out)


if __name__ == "__main__":
    key = jax.random.PRNGKey(0)

    # Module configuration: 4 dense features, embed_dim = 32
    dense_feat = ["f0", "f1", "f2", "f3"]
    embed_dim = 32
    F = len(dense_feat)

    k_w, k_x1, k_x2, k_x3 = jax.random.split(key, 4)
    # Deterministic stand-in for weight_init of each nn.Embedding(1, embed_dim) -> [F, E]
    weights = jax.random.normal(k_w, (F, embed_dim), dtype=jnp.float32) * 0.02

    # --- small, module-consistent shapes (batch=2), forced through the Pallas kernel ---
    B = 2
    feat_vals = jax.random.normal(k_x1, (B, F), dtype=jnp.float32)  # stacked feats dict

    out_axis2 = dense_embedding_forward(feat_vals, weights, axis=2, use_pallas=True)
    out_axis1 = dense_embedding_forward(feat_vals, weights, axis=1, use_pallas=True)
    out_both = dense_embedding_forward(feat_vals, weights, axis=0, use_pallas=True)
    jax.block_until_ready((out_axis2, out_axis1, out_both))

    ref3 = feat_vals[:, :, None] * weights[None, :, :]
    assert out_axis1.shape == (B, F, embed_dim)
    assert out_axis2.shape == (B, 1, F * embed_dim)
    assert out_both[0].shape == (B, F, embed_dim)
    assert out_both[1].shape == (B, F * embed_dim)
    assert jnp.allclose(out_axis1, ref3, atol=1e-6, rtol=1e-5)
    assert jnp.allclose(out_axis2, ref3.reshape(B, 1, -1), atol=1e-6, rtol=1e-5)
    assert jnp.allclose(out_both[0], ref3, atol=1e-6, rtol=1e-5)
    assert jnp.allclose(out_both[1], ref3.reshape(B, -1), atol=1e-6, rtol=1e-5)

    # --- medium, non-multiple batch: 2 "parallel" grid steps + ragged last block ---
    Bm = 3000
    med_vals = jax.random.normal(k_x2, (Bm, F), dtype=jnp.float32)
    med_out = dense_embedding_forward(med_vals, weights, axis=2, use_pallas=True)
    jax.block_until_ready(med_out)
    med_ref = (med_vals[:, :, None] * weights[None, :, :]).reshape(Bm, 1, -1)
    assert med_out.shape == (Bm, 1, F * embed_dim)
    assert jnp.allclose(med_out, med_ref, atol=1e-6, rtol=1e-5)

    # --- large batch: default use_pallas heuristic, TB=8192 tiles, ragged final tile ---
    Bb = 20000
    big_vals = jax.random.normal(k_x3, (Bb, F), dtype=jnp.float32)
    big_out = dense_embedding_forward(big_vals, weights, axis=2)
    jax.block_until_ready(big_out)
    big_ref = (big_vals[:, :, None] * weights[None, :, :]).reshape(Bb, 1, -1)
    assert big_out.shape == (Bb, 1, F * embed_dim)
    assert jnp.allclose(big_out, big_ref, atol=1e-6, rtol=1e-5)

    # --- bf16 output variant (halves writeback; accumulation stays exact f32) ---
    bf_out = dense_embedding_forward(big_vals, weights, axis=2,
                                     out_dtype=jnp.bfloat16, use_pallas=True)
    jax.block_until_ready(bf_out)
    assert jnp.allclose(bf_out.astype(jnp.float32), big_ref, atol=1e-3, rtol=1e-2)

    print("KERNEL_OK")
</pallas_src>

<mosaic_0001>
module attributes {stable_mosaic.version = 11 : i64} {
  func.func @dense_embed_kernel(%arg0: i32, %arg1: memref<2x32xbf16, #tpu.memory_space<vmem>>, %arg2: memref<32x128xbf16, #tpu.memory_space<vmem>>, %arg3: memref<2x128xf32, #tpu.memory_space<vmem>>) attributes {dimension_semantics = [#tpu.dimension_semantics<parallel>], iteration_bounds = array<i64: 1>, scalar_prefetch = 0 : i64, scratch_operands = 0 : i64, tpu.core_type = #tpu.core_type<tc>, window_params = [{transform_indices = @transform_0, window_bounds = array<i64: 2, 32>}, {pipeline_mode = #tpu.pipeline_mode<synchronous>, transform_indices = @transform_1, window_bounds = array<i64: 32, 128>}, {transform_indices = @transform_2, window_bounds = array<i64: 2, 128>}]} {
    %c0 = arith.constant 0 : index
    %c0_0 = arith.constant 0 : index
    %0 = vector.load %arg1[%c0, %c0_0] : memref<2x32xbf16, #tpu.memory_space<vmem>>, vector<2x32xbf16>
    %c0_1 = arith.constant 0 : index
    %c0_2 = arith.constant 0 : index
    %1 = vector.load %arg2[%c0_1, %c0_2] : memref<32x128xbf16, #tpu.memory_space<vmem>>, vector<32x128xbf16>
    %cst = arith.constant dense<0.000000e+00> : vector<2x128xf32>
    %2 = tpu.matmul %0, %1, %cst {dimension_numbers = #tpu.dot_dimension_numbers<[1], [0], [0], [1], [0, 0, 1, 1], [], []>} : vector<2x32xbf16>, vector<32x128xbf16>, vector<2x128xf32> -> vector<2x128xf32>
    %c0_3 = arith.constant 0 : index
    %c0_4 = arith.constant 0 : index
    %3 = vector.load %arg3[%c0_3, %c0_4] : memref<2x128xf32, #tpu.memory_space<vmem>>, vector<2x128xf32>
    tpu.vector_store %arg3[%c0_3, %c0_4], %2 {strides = array<i32>} : memref<2x128xf32, #tpu.memory_space<vmem>>, vector<2x128xf32>,
    return
  }
  func.func @transform_0(%arg0: i32) -> (i32, i32) {
    %c0_i32 = arith.constant 0 : i32
    %c0_i32_0 = arith.constant 0 : i32
    return %arg0, %c0_i32 : i32, i32
  }
  func.func @transform_1(%arg0: i32) -> (i32, i32) {
    %c0_i32 = arith.constant 0 : i32
    %c0_i32_0 = arith.constant 0 : i32
    %c0_i32_1 = arith.constant 0 : i32
    return %c0_i32, %c0_i32_0 : i32, i32
  }
  func.func @transform_2(%arg0: i32) -> (i32, i32) {
    %c0_i32 = arith.constant 0 : i32
    %c0_i32_0 = arith.constant 0 : i32
    return %arg0, %c0_i32 : i32, i32
  }
}

</mosaic_0001>

<bundles_post_ra>
// kernel: tpu_custom_call.1
= control target key start
LH: loop header
LB: loop body
LE: loop exit
PB: predicated region body
PF: predicated region fallthrough
CT: control target
= control target key end

     0   :  { %7 = vsyncpa [#allocation3], 0  ;;  %s277_s0 = inlined_call_operand.hbm [shape: bf16[2,32], index: 0, kind: input, shape index: {}]   ;;  %s278_s1 = inlined_call_operand.hbm [shape: bf16[32,128], index: 1, kind: input, shape index: {}]   ;;  %s279_s2 = inlined_call_operand.hbm [shape: f32[2,128], index: 2, kind: output, shape index: {}]  }
   0x1   :  { %8 = vsyncpa [#allocation6], 0 }
   0x2   :  { %9 = vsyncpa [#allocation4], 0  ;;  %s212_s9 = smov [#allocation2]   ;;  %s213_s11 = smov [#allocation5]  }
   0x3   :  { %s16_s10 = sshll.u32 %s212_s9, 4  ;;  %s25_s12 = sshll.u32 %s213_s11, 4  ;;  %s17_s10 = int_to_ptr.vmem [resolvable:$true] %s16_s10  ;;  %s234_s12 = int_to_ptr.vmem [resolvable:$true] %s25_s12 }
   0x4   :  { %s140_s15 = scalar_lea.hbm %s277_s0, 16 }
   0x5   :  { %p141_p0 = scmp.ne.s32.totalorder %s277_s0, %s140_s15  ;;  %p144_p1 = scmp.lt.u32.totalorder %s140_s15, %s277_s0 }
   0x7   :  { %p146_p2 = pnand %p144_p1, %p141_p0 }
   0x9   :  { %149 = shalt.err (!%p146_p2)
}
   0xa   :  { %s150_s20 = scalar_lea.vmem %s17_s10, 16  ;;  %s154_s21 = scalar_lea.vmem %s17_s10, 32 }
   0xb   :  { %p151_p3 = scmp.ne.s32.totalorder %s17_s10, %s150_s20  ;;  %p155_p4 = scmp.lt.s32.totalorder %s17_s10, %s17_s10 }
   0xc   :  { %p156_p5 = scmp.lt.s32.totalorder %s154_s21, %s150_s20 }
   0xe   :  { %p157_p6 = por %p156_p5, %p155_p4 }
  0x10   :  { %p158_p7 = pnand %p157_p6, %p151_p3 }
  0x12   :  { %161 = shalt.err (!%p158_p7)
}
  0x13   :  { %19 = dma.hbm_to_vmem [thread:$0]  %s277_s0, 16, %s17_s10, [#allocation3]  }
  0x14   :  { %s162_s26 = scalar_lea.hbm %s278_s1, 256 }
  0x15   :  { %p163_p8 = scmp.ne.s32.totalorder %s278_s1, %s162_s26  ;;  %p166_p9 = scmp.lt.u32.totalorder %s162_s26, %s278_s1 }
  0x17   :  { %p168_p10 = pnand %p166_p9, %p163_p8 }
  0x19   :  { %171 = shalt.err (!%p168_p10)
}
  0x1a   :  { %s172_s3 = scalar_lea.vmem %s234_s12, 256  ;;  %p177_p12 = scmp.lt.s32.totalorder %s234_s12, %s234_s12 }
  0x1b   :  { %p173_p11 = scmp.ne.s32.totalorder %s234_s12, %s172_s3  ;;  %p178_p13 = scmp.lt.s32.totalorder %s172_s3, %s172_s3 }
  0x1d   :  { %p179_p0 = por %p178_p13, %p177_p12 }
  0x1f   :  { %p180_p1 = pnand %p179_p0, %p173_p11 }
  0x21   :  { %183 = shalt.err (!%p180_p1)
}
  0x22   :  { %s214_s0 = smov 64   ;;  %s215_s4 = smov 4  }
  0x23   :  { %31 = dma.hbm_to_vmem [thread:$0]  %s278_s1, 256, %s234_s12, [#allocation6], %s214_s0, %s214_s0, %s215_s4  }
  0x24   :  { %206 = dma.done.wait [#allocation3], 16  }
  0x25   :  { %207 = vsyncadd [#allocation3], 4294967280 }
  0x26   :  { %208 = dma.done.wait [#allocation6], 256  }
  0x27   :  { %209 = vsyncadd [#allocation6], 4294967040  ;;  %v216_v0 = vmov 0.0   ;;  %vm217_vm0 = vmmov 0   ;;  %v138_v1 = vld [vmem:[#allocation5] sm:$0xff]   ;;  %v139_v2 = vld [vmem:[#allocation5 + $0x8] sm:$0xff]  }
  0x28   :  { %123 = vmatprep.subr.bf16.mxu0 %v216_v0  ;;  %127 = vmatprep.mubr.msk.bf16.mxu0 %vm217_vm0, %v216_v0  ;;  %v39_v3 = vld [vmem:[#allocation2] sm:$0x1]  ;;  %vm56_vm1 = vcmask 261120   ;;  %s218_s7 = smov [#allocation7]  }
  0x29   :  { %124 = vmatpush3.bf16.msra.mxu0 %v138_v1  ;;  %s107_s8 = sshll.u32 %s218_s7, 4  ;;  %s108_s8 = int_to_ptr.vmem [resolvable:$true] %s107_s8 }
  0x2a   :  { %125 = vmatprep.subr.bf16.mxu0 %v216_v0  ;;  %s184_s1 = scalar_lea.vmem %s108_s8, 32  ;;  %p189_p3 = scmp.lt.s32.totalorder %s108_s8, %s108_s8 }
  0x2b   :  { %p185_p2 = scmp.ne.s32.totalorder %s108_s8, %s184_s1  ;;  %p190_p4 = scmp.lt.s32.totalorder %s184_s1, %s184_s1 }
  0x2d   :  { %126 = vmatpush3.bf16.msra.mxu0 %v139_v2  ;;  %p191_p5 = por %p190_p4, %p189_p3 }
  0x2f   :  { %p192_p6 = pnand %p191_p5, %p185_p2 }
  0x30   :  { %128 = vmatmul.mubr.msk.bf16.vlgmr.msra.gmra.mrb[0].mxu0 %vm56_vm1, %v39_v3 }
 0x103   :  { %v94_v4 = vpop.f32.mrb[0].mxu0 }
 0x104   :  { %100 = vst [vmem:[#allocation7] sm:$0x3] %v94_v4  ;;  %v129_v5 = vpop.f32.mrb[1].mxu0 }
 0x105   :  { %v97_v6 = vpop.f32.mrb[2].mxu0 }
 0x106   :  { %195 = shalt.err (!%p192_p6)
}
 0x107   :  { %s196_s11 = scalar_lea.hbm %s279_s2, 32 }
 0x108   :  { %p197_p7 = scmp.ne.s32.totalorder %s279_s2, %s196_s11  ;;  %p200_p8 = scmp.lt.u32.totalorder %s196_s11, %s279_s2 }
 0x10a   :  { %p202_p9 = pnand %p200_p8, %p197_p7 }
 0x10c   :  { %205 = shalt.err (!%p202_p9)
}
 0x10d   :  { %110 = dma.vmem_to_hbm [thread:$0]  %s108_s8, 32, %s279_s2, [#allocation4]   ;;  %v130_v7 = vpop.f32.mrb[3].mxu0 }
 0x10e   :  { %210 = dma.done.wait [#allocation4], 32  }
 0x10f   :  { %211 = vsyncadd [#allocation4], 4294967264 }
 0x110   :  { %114 = vsyncpa [#allocation3], 1 }
 0x111   :  { %115 = vsyncpa [#allocation6], 1 }
 0x112   :  { %116 = vsyncpa [#allocation4], 1 }

</bundles_post_ra>
